<compile_context>
chip_gen: v7x
topology: tpu7x:2x2x1
jax: 0.10.0
libtpu: 0.0.40
codegen_flags: <defaults>
</compile_context>

<pallas_src>
import functools

import jax
import jax.numpy as jnp
from jax.experimental import pallas as pl
from jax.experimental.pallas import tpu as pltpu


def _captioner_kernel(x_ref, vctx_ref, wx_ref, wh_ref, wo_ref,
                      out_ref, buf_ref):
    """One grid step == one batch block, full T-step teacher-forced recurrence.

    x_ref    : (T*BB, E) bf16  embedded tokens, rows ordered (t, batch_within)
    vctx_ref : (BB, H)   f32   pre-projected visual context (timestep-invariant)
    wx_ref   : (E, H)    bf16  input projection
    wh_ref   : (H, H)    bf16  recurrent projection
    wo_ref   : (H, V)    bf16  output projection (logits)
    out_ref  : (T*BB, V) f32   logits, rows ordered (t, batch_within)
    buf_ref  : (T*BB, H) f32   VMEM scratch: holds xp_t before step t, h_t after
    """
    BB = vctx_ref.shape[0]
    TBB, H = buf_ref.shape
    T = TBB // BB

    # ---- Prologue: batched input projection for every timestep (one MXU matmul).
    buf_ref[...] = jnp.dot(x_ref[...], wx_ref[...],
                           preferred_element_type=jnp.float32)

    vctx = vctx_ref[...]                       # (BB, H) f32, added every step
    w_h = wh_ref[...]                          # (H, H)  bf16

    # ---- Recurrence: strictly sequential over T, h carried in registers (f32).
    # T is a trace-time constant and small, so the Python loop fully unrolls.
    # buf_ref rows for step t hold the input projection before the step and are
    # overwritten with h_t afterwards (in-place reuse -> single scratch buffer).
    h = jnp.zeros((BB, H), jnp.float32)
    for t in range(T):
        sl = pl.ds(t * BB, BB)                 # static, sublane-aligned slice
        h = jnp.tanh(
            buf_ref[sl, :] + vctx
            + jnp.dot(h.astype(w_h.dtype), w_h,
                      preferred_element_type=jnp.float32))
        buf_ref[sl, :] = h

    # ---- Epilogue: one batched output projection over all (t, b) rows.
    out_ref[...] = jnp.dot(buf_ref[...].astype(wo_ref.dtype), wo_ref[...],
                           preferred_element_type=jnp.float32)


def base_captioner_forward(images, seq, params, *, batch_block=8):
    """JAX/Pallas equivalent of BaseCaptioner.forward(images, seq).

    images : (B, C, H, W) float32   (NCHW, as in PyTorch)
    seq    : (B, T)       int32 token ids (teacher forcing inputs)
    returns: (B, T, V)    float32 per-step outputs (logits)
    """
    emb, w_v, w_x, w_h, w_o = (params[k] for k in
                               ("emb", "w_v", "w_x", "w_h", "w_o"))
    B, C, Hi, Wi = images.shape
    T = seq.shape[1]
    E = emb.shape[1]
    H = w_h.shape[0]
    V = w_o.shape[1]

    BB = min(batch_block, B)
    assert BB % 8 == 0 and B % BB == 0, "batch must be a multiple of 8"
    NB = B // BB

    # ---- Glue hoisted out of the sequential kernel:
    # init_state + visual context: mean-pool over HW and project once in XLA.
    vis = jnp.mean(images.reshape(B, C, Hi * Wi), axis=-1)            # (B, C)
    vctx = jnp.dot(vis, w_v.astype(jnp.float32),
                   preferred_element_type=jnp.float32)                # (B, H) f32

    # Embedding gather (XLA) and layout: rows ordered (batch_block, t, batch_within)
    # so every grid step sees one lane-dense 2-D slab with no in-kernel reshapes.
    x_emb = emb[seq]                                                  # (B, T, E) bf16
    x_blk = jnp.reshape(
        jnp.transpose(jnp.reshape(x_emb, (NB, BB, T, E)), (0, 2, 1, 3)),
        (NB * T * BB, E))

    grid_spec = pltpu.PrefetchScalarGridSpec(
        num_scalar_prefetch=0,
        grid=(NB,),                       # batch blocks; T loop lives in the kernel
        in_specs=[
            pl.BlockSpec((T * BB, E), lambda b: (b, 0)),   # embedded tokens (block)
            pl.BlockSpec((BB, H), lambda b: (b, 0)),       # visual context  (block)
            pl.BlockSpec((E, H), lambda b: (0, 0)),        # W_x (constant index)
            pl.BlockSpec((H, H), lambda b: (0, 0)),        # W_h (constant index)
            pl.BlockSpec((H, V), lambda b: (0, 0)),        # W_o (constant index)
        ],
        out_specs=pl.BlockSpec((T * BB, V), lambda b: (b, 0)),
        scratch_shapes=[
            pltpu.VMEM((T * BB, H), jnp.float32),   # input projection / hidden states
        ],
    )

    out_flat = pl.pallas_call(
        _captioner_kernel,
        out_shape=jax.ShapeDtypeStruct((NB * T * BB, V), jnp.float32),
        grid_spec=grid_spec,
        compiler_params=pltpu.CompilerParams(
            dimension_semantics=("parallel",),       # batch blocks are independent
            vmem_limit_bytes=32 * 1024 * 1024),
    )(x_blk, vctx, w_x, w_h, w_o)

    # (NB, T, BB, V) -> (B, T, V), matching torch.cat([o.unsqueeze(1)], 1).
    # TODO(synk): for a realistic vocab keep the logits in this layout (or fuse the
    # permute into the loss) to avoid an extra HBM pass over the largest tensor.
    out = jnp.reshape(
        jnp.transpose(jnp.reshape(out_flat, (NB, T, BB, V)), (0, 2, 1, 3)),
        (B, T, V))
    return out


def init_params(key, *, vocab, embed, hidden, channels, dtype=jnp.bfloat16):
    """Deterministic synthetic parameters (no checkpoint load). bf16 MXU operands."""
    ks = jax.random.split(key, 5)
    s = 0.02

    def mk(k, shape):
        return (s * jax.random.normal(k, shape, jnp.float32)).astype(dtype)

    return {
        "emb": mk(ks[0], (vocab, embed)),
        "w_v": mk(ks[1], (channels, hidden)),
        "w_x": mk(ks[2], (embed, hidden)),
        "w_h": mk(ks[3], (hidden, hidden)),
        "w_o": mk(ks[4], (hidden, vocab)),
    }


def _reference_forward(images, seq, params):
    """Pure-JAX (f32) reference of the same teacher-forced recurrence."""
    emb, w_v, w_x, w_h, w_o = (params[k].astype(jnp.float32) for k in
                               ("emb", "w_v", "w_x", "w_h", "w_o"))
    B, C, Hi, Wi = images.shape
    vis = jnp.mean(images.reshape(B, C, Hi * Wi), axis=-1)
    vctx = vis @ w_v
    x = emb[seq].astype(jnp.float32)                    # (B, T, E)

    def step(h, x_t):
        h = jnp.tanh(x_t @ w_x + h @ w_h + vctx)
        return h, h @ w_o

    _, outs = jax.lax.scan(step, jnp.zeros((B, w_h.shape[0]), jnp.float32),
                           jnp.swapaxes(x, 0, 1))
    return jnp.swapaxes(outs, 0, 1)                     # (B, T, V)


if __name__ == "__main__":
    # Small shapes respecting the TPU (8, 128) tiling: batch=16 (two parallel
    # batch blocks of 8), channels=4, spatial=16x16, seq=8, embed=hidden=vocab=128.
    B, C, Hi, Wi = 16, 4, 16, 16
    T, VOCAB, EMBED, HIDDEN = 8, 128, 128, 128

    key = jax.random.PRNGKey(0)
    k_img, k_seq, k_par = jax.random.split(key, 3)

    images = jax.random.normal(k_img, (B, C, Hi, Wi), jnp.float32)   # NCHW
    seq = jax.random.randint(k_seq, (B, T), 0, VOCAB, jnp.int32)
    params = init_params(k_par, vocab=VOCAB, embed=EMBED,
                         hidden=HIDDEN, channels=C)

    fwd = jax.jit(functools.partial(base_captioner_forward, params=params))
    out = fwd(images, seq)
    jax.block_until_ready(out)

    assert out.shape == (B, T, VOCAB), out.shape
    assert out.dtype == jnp.float32
    assert bool(jnp.all(jnp.isfinite(out)))

    ref = _reference_forward(images, seq, params)
    max_err = float(jnp.max(jnp.abs(out - ref)))
    assert bool(jnp.allclose(out, ref, atol=1e-3, rtol=5e-2)), max_err

    print("KERNEL_OK")
</pallas_src>

<mosaic_0001>
module attributes {stable_mosaic.version = 11 : i64} {
  func.func @_captioner_kernel(%arg0: i32, %arg1: memref<64x128xbf16, #tpu.memory_space<vmem>>, %arg2: memref<8x128xf32, #tpu.memory_space<vmem>>, %arg3: memref<128x128xbf16, #tpu.memory_space<vmem>>, %arg4: memref<128x128xbf16, #tpu.memory_space<vmem>>, %arg5: memref<128x128xbf16, #tpu.memory_space<vmem>>, %arg6: memref<64x128xf32, #tpu.memory_space<vmem>>, %arg7: memref<64x128xf32, #tpu.memory_space<vmem>>) attributes {dimension_semantics = [#tpu.dimension_semantics<parallel>], iteration_bounds = array<i64: 2>, scalar_prefetch = 0 : i64, scratch_operands = 1 : i64, tpu.core_type = #tpu.core_type<tc>, window_params = [{transform_indices = @transform_0, window_bounds = array<i64: 64, 128>}, {transform_indices = @transform_1, window_bounds = array<i64: 8, 128>}, {pipeline_mode = #tpu.pipeline_mode<synchronous>, transform_indices = @transform_2, window_bounds = array<i64: 128, 128>}, {pipeline_mode = #tpu.pipeline_mode<synchronous>, transform_indices = @transform_3, window_bounds = array<i64: 128, 128>}, {pipeline_mode = #tpu.pipeline_mode<synchronous>, transform_indices = @transform_4, window_bounds = array<i64: 128, 128>}, {transform_indices = @transform_5, window_bounds = array<i64: 64, 128>}]} {
    %c0 = arith.constant 0 : index
    %c0_0 = arith.constant 0 : index
    %0 = vector.load %arg1[%c0, %c0_0] : memref<64x128xbf16, #tpu.memory_space<vmem>>, vector<64x128xbf16>
    %c0_1 = arith.constant 0 : index
    %c0_2 = arith.constant 0 : index
    %1 = vector.load %arg3[%c0_1, %c0_2] : memref<128x128xbf16, #tpu.memory_space<vmem>>, vector<128x128xbf16>
    %cst = arith.constant dense<0.000000e+00> : vector<64x128xf32>
    %2 = tpu.matmul %0, %1, %cst {dimension_numbers = #tpu.dot_dimension_numbers<[1], [0], [0], [1], [0, 0, 1, 1], [], []>} : vector<64x128xbf16>, vector<128x128xbf16>, vector<64x128xf32> -> vector<64x128xf32>
    %c0_3 = arith.constant 0 : index
    %c0_4 = arith.constant 0 : index
    %3 = vector.load %arg7[%c0_3, %c0_4] : memref<64x128xf32, #tpu.memory_space<vmem>>, vector<64x128xf32>
    tpu.vector_store %arg7[%c0_3, %c0_4], %2 {strides = array<i32>} : memref<64x128xf32, #tpu.memory_space<vmem>>, vector<64x128xf32>,
    %c0_5 = arith.constant 0 : index
    %c0_6 = arith.constant 0 : index
    %4 = vector.load %arg2[%c0_5, %c0_6] : memref<8x128xf32, #tpu.memory_space<vmem>>, vector<8x128xf32>
    %c0_7 = arith.constant 0 : index
    %c0_8 = arith.constant 0 : index
    %5 = vector.load %arg4[%c0_7, %c0_8] : memref<128x128xbf16, #tpu.memory_space<vmem>>, vector<128x128xbf16>
    %cst_9 = arith.constant 0.000000e+00 : f32
    %6 = vector.broadcast %cst_9 : f32 to vector<8x128xf32>
    %c0_10 = arith.constant 0 : index
    %c0_11 = arith.constant 0 : index
    %7 = vector.load %arg7[%c0_10, %c0_11] : memref<64x128xf32, #tpu.memory_space<vmem>>, vector<8x128xf32>
    %8 = arith.addf %7, %4 : vector<8x128xf32>
    %9 = arith.truncf %6 : vector<8x128xf32> to vector<8x128xbf16>
    %cst_12 = arith.constant dense<0.000000e+00> : vector<8x128xf32>
    %10 = tpu.matmul %9, %5, %cst_12 {dimension_numbers = #tpu.dot_dimension_numbers<[1], [0], [0], [1], [0, 0, 1, 1], [], []>} : vector<8x128xbf16>, vector<128x128xbf16>, vector<8x128xf32> -> vector<8x128xf32>
    %11 = arith.addf %8, %10 : vector<8x128xf32>
    %12 = math.tanh %11 : vector<8x128xf32>
    %c0_13 = arith.constant 0 : index
    %c0_14 = arith.constant 0 : index
    %13 = vector.load %arg7[%c0_13, %c0_14] : memref<64x128xf32, #tpu.memory_space<vmem>>, vector<8x128xf32>
    tpu.vector_store %arg7[%c0_13, %c0_14], %12 {strides = array<i32>} : memref<64x128xf32, #tpu.memory_space<vmem>>, vector<8x128xf32>,
    %c8 = arith.constant 8 : index
    %c0_15 = arith.constant 0 : index
    %14 = vector.load %arg7[%c8, %c0_15] : memref<64x128xf32, #tpu.memory_space<vmem>>, vector<8x128xf32>
    %15 = arith.addf %14, %4 : vector<8x128xf32>
    %16 = arith.truncf %12 : vector<8x128xf32> to vector<8x128xbf16>
    %cst_16 = arith.constant dense<0.000000e+00> : vector<8x128xf32>
    %17 = tpu.matmul %16, %5, %cst_16 {dimension_numbers = #tpu.dot_dimension_numbers<[1], [0], [0], [1], [0, 0, 1, 1], [], []>} : vector<8x128xbf16>, vector<128x128xbf16>, vector<8x128xf32> -> vector<8x128xf32>
    %18 = arith.addf %15, %17 : vector<8x128xf32>
    %19 = math.tanh %18 : vector<8x128xf32>
    %c8_17 = arith.constant 8 : index
    %c0_18 = arith.constant 0 : index
    %20 = vector.load %arg7[%c8_17, %c0_18] : memref<64x128xf32, #tpu.memory_space<vmem>>, vector<8x128xf32>
    tpu.vector_store %arg7[%c8_17, %c0_18], %19 {strides = array<i32>} : memref<64x128xf32, #tpu.memory_space<vmem>>, vector<8x128xf32>,
    %c16 = arith.constant 16 : index
    %c0_19 = arith.constant 0 : index
    %21 = vector.load %arg7[%c16, %c0_19] : memref<64x128xf32, #tpu.memory_space<vmem>>, vector<8x128xf32>
    %22 = arith.addf %21, %4 : vector<8x128xf32>
    %23 = arith.truncf %19 : vector<8x128xf32> to vector<8x128xbf16>
    %cst_20 = arith.constant dense<0.000000e+00> : vector<8x128xf32>
    %24 = tpu.matmul %23, %5, %cst_20 {dimension_numbers = #tpu.dot_dimension_numbers<[1], [0], [0], [1], [0, 0, 1, 1], [], []>} : vector<8x128xbf16>, vector<128x128xbf16>, vector<8x128xf32> -> vector<8x128xf32>
    %25 = arith.addf %22, %24 : vector<8x128xf32>
    %26 = math.tanh %25 : vector<8x128xf32>
    %c16_21 = arith.constant 16 : index
    %c0_22 = arith.constant 0 : index
    %27 = vector.load %arg7[%c16_21, %c0_22] : memref<64x128xf32, #tpu.memory_space<vmem>>, vector<8x128xf32>
    tpu.vector_store %arg7[%c16_21, %c0_22], %26 {strides = array<i32>} : memref<64x128xf32, #tpu.memory_space<vmem>>, vector<8x128xf32>,
    %c24 = arith.constant 24 : index
    %c0_23 = arith.constant 0 : index
    %28 = vector.load %arg7[%c24, %c0_23] : memref<64x128xf32, #tpu.memory_space<vmem>>, vector<8x128xf32>
    %29 = arith.addf %28, %4 : vector<8x128xf32>
    %30 = arith.truncf %26 : vector<8x128xf32> to vector<8x128xbf16>
    %cst_24 = arith.constant dense<0.000000e+00> : vector<8x128xf32>
    %31 = tpu.matmul %30, %5, %cst_24 {dimension_numbers = #tpu.dot_dimension_numbers<[1], [0], [0], [1], [0, 0, 1, 1], [], []>} : vector<8x128xbf16>, vector<128x128xbf16>, vector<8x128xf32> -> vector<8x128xf32>
    %32 = arith.addf %29, %31 : vector<8x128xf32>
    %33 = math.tanh %32 : vector<8x128xf32>
    %c24_25 = arith.constant 24 : index
    %c0_26 = arith.constant 0 : index
    %34 = vector.load %arg7[%c24_25, %c0_26] : memref<64x128xf32, #tpu.memory_space<vmem>>, vector<8x128xf32>
    tpu.vector_store %arg7[%c24_25, %c0_26], %33 {strides = array<i32>} : memref<64x128xf32, #tpu.memory_space<vmem>>, vector<8x128xf32>,
    %c32 = arith.constant 32 : index
    %c0_27 = arith.constant 0 : index
    %35 = vector.load %arg7[%c32, %c0_27] : memref<64x128xf32, #tpu.memory_space<vmem>>, vector<8x128xf32>
    %36 = arith.addf %35, %4 : vector<8x128xf32>
    %37 = arith.truncf %33 : vector<8x128xf32> to vector<8x128xbf16>
    %cst_28 = arith.constant dense<0.000000e+00> : vector<8x128xf32>
    %38 = tpu.matmul %37, %5, %cst_28 {dimension_numbers = #tpu.dot_dimension_numbers<[1], [0], [0], [1], [0, 0, 1, 1], [], []>} : vector<8x128xbf16>, vector<128x128xbf16>, vector<8x128xf32> -> vector<8x128xf32>
    %39 = arith.addf %36, %38 : vector<8x128xf32>
    %40 = math.tanh %39 : vector<8x128xf32>
    %c32_29 = arith.constant 32 : index
    %c0_30 = arith.constant 0 : index
    %41 = vector.load %arg7[%c32_29, %c0_30] : memref<64x128xf32, #tpu.memory_space<vmem>>, vector<8x128xf32>
    tpu.vector_store %arg7[%c32_29, %c0_30], %40 {strides = array<i32>} : memref<64x128xf32, #tpu.memory_space<vmem>>, vector<8x128xf32>,
    %c40 = arith.constant 40 : index
    %c0_31 = arith.constant 0 : index
    %42 = vector.load %arg7[%c40, %c0_31] : memref<64x128xf32, #tpu.memory_space<vmem>>, vector<8x128xf32>
    %43 = arith.addf %42, %4 : vector<8x128xf32>
    %44 = arith.truncf %40 : vector<8x128xf32> to vector<8x128xbf16>
    %cst_32 = arith.constant dense<0.000000e+00> : vector<8x128xf32>
    %45 = tpu.matmul %44, %5, %cst_32 {dimension_numbers = #tpu.dot_dimension_numbers<[1], [0], [0], [1], [0, 0, 1, 1], [], []>} : vector<8x128xbf16>, vector<128x128xbf16>, vector<8x128xf32> -> vector<8x128xf32>
    %46 = arith.addf %43, %45 : vector<8x128xf32>
    %47 = math.tanh %46 : vector<8x128xf32>
    %c40_33 = arith.constant 40 : index
    %c0_34 = arith.constant 0 : index
    %48 = vector.load %arg7[%c40_33, %c0_34] : memref<64x128xf32, #tpu.memory_space<vmem>>, vector<8x128xf32>
    tpu.vector_store %arg7[%c40_33, %c0_34], %47 {strides = array<i32>} : memref<64x128xf32, #tpu.memory_space<vmem>>, vector<8x128xf32>,
    %c48 = arith.constant 48 : index
    %c0_35 = arith.constant 0 : index
    %49 = vector.load %arg7[%c48, %c0_35] : memref<64x128xf32, #tpu.memory_space<vmem>>, vector<8x128xf32>
    %50 = arith.addf %49, %4 : vector<8x128xf32>
    %51 = arith.truncf %47 : vector<8x128xf32> to vector<8x128xbf16>
    %cst_36 = arith.constant dense<0.000000e+00> : vector<8x128xf32>
    %52 = tpu.matmul %51, %5, %cst_36 {dimension_numbers = #tpu.dot_dimension_numbers<[1], [0], [0], [1], [0, 0, 1, 1], [], []>} : vector<8x128xbf16>, vector<128x128xbf16>, vector<8x128xf32> -> vector<8x128xf32>
    %53 = arith.addf %50, %52 : vector<8x128xf32>
    %54 = math.tanh %53 : vector<8x128xf32>
    %c48_37 = arith.constant 48 : index
    %c0_38 = arith.constant 0 : index
    %55 = vector.load %arg7[%c48_37, %c0_38] : memref<64x128xf32, #tpu.memory_space<vmem>>, vector<8x128xf32>
    tpu.vector_store %arg7[%c48_37, %c0_38], %54 {strides = array<i32>} : memref<64x128xf32, #tpu.memory_space<vmem>>, vector<8x128xf32>,
    %c56 = arith.constant 56 : index
    %c0_39 = arith.constant 0 : index
    %56 = vector.load %arg7[%c56, %c0_39] : memref<64x128xf32, #tpu.memory_space<vmem>>, vector<8x128xf32>
    %57 = arith.addf %56, %4 : vector<8x128xf32>
    %58 = arith.truncf %54 : vector<8x128xf32> to vector<8x128xbf16>
    %cst_40 = arith.constant dense<0.000000e+00> : vector<8x128xf32>
    %59 = tpu.matmul %58, %5, %cst_40 {dimension_numbers = #tpu.dot_dimension_numbers<[1], [0], [0], [1], [0, 0, 1, 1], [], []>} : vector<8x128xbf16>, vector<128x128xbf16>, vector<8x128xf32> -> vector<8x128xf32>
    %60 = arith.addf %57, %59 : vector<8x128xf32>
    %61 = math.tanh %60 : vector<8x128xf32>
    %c56_41 = arith.constant 56 : index
    %c0_42 = arith.constant 0 : index
    %62 = vector.load %arg7[%c56_41, %c0_42] : memref<64x128xf32, #tpu.memory_space<vmem>>, vector<8x128xf32>
    tpu.vector_store %arg7[%c56_41, %c0_42], %61 {strides = array<i32>} : memref<64x128xf32, #tpu.memory_space<vmem>>, vector<8x128xf32>,
    %c0_43 = arith.constant 0 : index
    %c0_44 = arith.constant 0 : index
    %63 = vector.load %arg7[%c0_43, %c0_44] : memref<64x128xf32, #tpu.memory_space<vmem>>, vector<64x128xf32>
    %64 = arith.truncf %63 : vector<64x128xf32> to vector<64x128xbf16>
    %c0_45 = arith.constant 0 : index
    %c0_46 = arith.constant 0 : index
    %65 = vector.load %arg5[%c0_45, %c0_46] : memref<128x128xbf16, #tpu.memory_space<vmem>>, vector<128x128xbf16>
    %cst_47 = arith.constant dense<0.000000e+00> : vector<64x128xf32>
    %66 = tpu.matmul %64, %65, %cst_47 {dimension_numbers = #tpu.dot_dimension_numbers<[1], [0], [0], [1], [0, 0, 1, 1], [], []>} : vector<64x128xbf16>, vector<128x128xbf16>, vector<64x128xf32> -> vector<64x128xf32>
    %c0_48 = arith.constant 0 : index
    %c0_49 = arith.constant 0 : index
    %67 = vector.load %arg6[%c0_48, %c0_49] : memref<64x128xf32, #tpu.memory_space<vmem>>, vector<64x128xf32>
    tpu.vector_store %arg6[%c0_48, %c0_49], %66 {strides = array<i32>} : memref<64x128xf32, #tpu.memory_space<vmem>>, vector<64x128xf32>,
    return
  }
  func.func @transform_0(%arg0: i32) -> (i32, i32) {
    %c0_i32 = arith.constant 0 : i32
    %c0_i32_0 = arith.constant 0 : i32
    return %arg0, %c0_i32 : i32, i32
  }
  func.func @transform_1(%arg0: i32) -> (i32, i32) {
    %c0_i32 = arith.constant 0 : i32
    %c0_i32_0 = arith.constant 0 : i32
    return %arg0, %c0_i32 : i32, i32
  }
  func.func @transform_2(%arg0: i32) -> (i32, i32) {
    %c0_i32 = arith.constant 0 : i32
    %c0_i32_0 = arith.constant 0 : i32
    %c0_i32_1 = arith.constant 0 : i32
    return %c0_i32, %c0_i32_0 : i32, i32
  }
  func.func @transform_3(%arg0: i32) -> (i32, i32) {
    %c0_i32 = arith.constant 0 : i32
    %c0_i32_0 = arith.constant 0 : i32
    %c0_i32_1 = arith.constant 0 : i32
    return %c0_i32, %c0_i32_0 : i32, i32
  }
  func.func @transform_4(%arg0: i32) -> (i32, i32) {
    %c0_i32 = arith.constant 0 : i32
    %c0_i32_0 = arith.constant 0 : i32
    %c0_i32_1 = arith.constant 0 : i32
    return %c0_i32, %c0_i32_0 : i32, i32
  }
  func.func @transform_5(%arg0: i32) -> (i32, i32) {
    %c0_i32 = arith.constant 0 : i32
    %c0_i32_0 = arith.constant 0 : i32
    return %arg0, %c0_i32 : i32, i32
  }
}

</mosaic_0001>

<bundles_post_ra>
// kernel: base_captioner_forward.1
= control target key start
LH: loop header
LB: loop body
LE: loop exit
PB: predicated region body
PF: predicated region fallthrough
CT: control target
= control target key end

     0   :  { %s1504_s18 = smov 0   ;;  %s1816_s0 = inlined_call_operand.vmem [shape: bf16[128,128], index: 0, kind: input, shape index: {}]   ;;  %s1817_s1 = inlined_call_operand.vmem [shape: f32[16,128], index: 1, kind: input, shape index: {}]   ;;  %s1818_s2 = inlined_call_operand.vmem [shape: bf16[128,128], index: 2, kind: input, shape index: {}]   ;;  %s1819_s3 = inlined_call_operand.vmem [shape: bf16[128,128], index: 3, kind: input, shape index: {}]   ;;  %s1820_s4 = inlined_call_operand.vmem [shape: bf16[128,128], index: 4, kind: input, shape index: {}]   ;;  %s1821_s5 = inlined_call_operand.vmem [shape: f32[128,128], index: 5, kind: output, shape index: {}]  }
   0x1 LB: > { %s1510_s19 = sadd.s32 4294967295, %s1469_s18   ;;  %p1068_p0 = scmp.ge.s32.totalorder %s1469_s18, 1  ;;  %s1469_s18 = sphi %s1504_s18, %s15_s18  }
   0x2   : > { %p197_p1 = scmp.lt.s32.totalorder %s1469_s18, 3 }
   0x4   : > { %p198_p2 = pnand %p1068_p0, %p197_p1 }
   0x5   : > { %v1419_v0 = vld [vmem:[%s1818_s2] sm:$0xff] (!%p198_p2)   ;;  %v1471_v1 = vmov (!%p198_p2), 0.0   ;;  %s1069_s24 = sshll.u32 (!%p198_p2), %s1510_s19, 3  ;;  %v1421_v3 = vld [vmem:[%s1818_s2 + $0x8] sm:$0xff] (!%p198_p2)   ;;  %v1423_v5 = vld [vmem:[%s1818_s2 + $0x10] sm:$0xff] (!%p198_p2)   ;;  %vm1472_vm0 = vmmov (!%p198_p2), 0  }
   0x6   : > { %201 = sbr.rel (%p198_p2) target bundleno = 2073 (0x819), region = 40  ;;  %1224 = vmatprep.subr.bf16.mxu1 (!%p198_p2), %v1471_v1  ;;  %v1521_v2 = vld [vmem:[%s1819_s3] sm:$0xff] (!%p198_p2)   ;;  %1200 = vmatprep.subr.bf16.mxu0 (!%p198_p2), %v1419_v0  ;;  %p230_p3 = scmp.lt.s32.totalorder (!%p198_p2), %s1069_s24, 15  ;;  %v1531_v4 = vld [vmem:[%s1819_s3 + $0x8] sm:$0xff] (!%p198_p2)   ;;  %v1545_v6 = vld [vmem:[%s1819_s3 + $0x10] sm:$0xff] (!%p198_p2)   ;;  %v1473_v19 = vmov (!%p198_p2), 0  }
   0x7   : > { %1201 = vmatpush3.bf16.msra.mxu0 (!%p198_p2), %v1419_v0  ;;  %1225 = vmatpush3.bf16.msra.mxu1 (!%p198_p2), %v1521_v2  ;;  %v1425_v7 = vld [vmem:[%s1818_s2 + $0x18] sm:$0xff] (!%p198_p2)   ;;  %v1427_v9 = vld [vmem:[%s1818_s2 + $0x20] sm:$0xff] (!%p198_p2)   ;;  %v1429_v11 = vld [vmem:[%s1818_s2 + $0x28] sm:$0xff] (!%p198_p2)   ;;  %p235_p4 = scmp.lt.s32.totalorder (!%p198_p2), %s1510_s19, 1 }
   0x8   : > { %1202 = vmatprep.subr.bf16.mxu0 (!%p198_p2), %v1421_v3  ;;  %1226 = vmatprep.subr.bf16.mxu1 (!%p198_p2), %v1471_v1  ;;  %v1556_v8 = vld [vmem:[%s1819_s3 + $0x18] sm:$0xff] (!%p198_p2)   ;;  %v1570_v10 = vld [vmem:[%s1819_s3 + $0x20] sm:$0xff] (!%p198_p2)   ;;  %v1581_v13 = vld [vmem:[%s1819_s3 + $0x28] sm:$0xff] (!%p198_p2)  }
   0x9   : > { %1240 = vmatprep.mubr.msk.bf16.mxu1 (!%p198_p2), %vm1472_vm0, %v1471_v1  ;;  %v1431_v14 = vld [vmem:[%s1818_s2 + $0x30] sm:$0xff] (!%p198_p2)   ;;  %v1433_v16 = vld [vmem:[%s1818_s2 + $0x38] sm:$0xff] (!%p198_p2)  }
   0xa   : > { %v1591_v15 = vld [vmem:[%s1819_s3 + $0x30] sm:$0xff] (!%p198_p2)   ;;  %v1602_v17 = vld [vmem:[%s1819_s3 + $0x38] sm:$0xff] (!%p198_p2)  }
   0xb   : > { %1203 = vmatpush3.bf16.msra.mxu0 (!%p198_p2), %v1421_v3  ;;  %1227 = vmatpush3.bf16.msra.mxu1 (!%p198_p2), %v1531_v4 }
   0xc   : > { %1204 = vmatprep.subr.bf16.mxu0 (!%p198_p2), %v1423_v5  ;;  %1228 = vmatprep.subr.bf16.mxu1 (!%p198_p2), %v1471_v1 }
   0xd   : > { %s1823_s24 = smov (!%p230_p3, %s1069_s24), 15  ;;  %s1825_s19 = smov (!%p235_p4, %s1510_s19), 1 }
   0xe   : > { %s1070_s10 = sshll.u32 %s1823_s24, 2  ;;  %s1073_s7 = sshll.u32 %s1823_s24, 3 }
   0xf   : > { %1205 = vmatpush3.bf16.msra.mxu0 %v1423_v5  ;;  %1229 = vmatpush3.bf16.msra.mxu1 %v1545_v6  ;;  %s1565_s17 = scalar_lea.vmem %s1816_s0, %s1070_s10  ;;  %s1071_s10 = sshll.u32 %s1825_s19, 3 }
  0x10   : > { %1206 = vmatprep.subr.bf16.mxu0 %v1425_v7  ;;  %1230 = vmatprep.subr.bf16.mxu1 %v1471_v1  ;;  %v1435_v12 = vld [vmem:[%s1565_s17] sm:$0xff]   ;;  %v1436_v18 = vld [vmem:[%s1565_s17 + $0x8] sm:$0xff]   ;;  %v1437_v20 = vld [vmem:[%s1565_s17 + $0x10] sm:$0xff]   ;;  %s238_s13 = scalar_lea.vmem %s1817_s1, %s1071_s10  ;;  %s243_s10 = scalar_lea.vmem %s1821_s5, %s1073_s7 }
  0x11   : > { %1216 = vmatprep.mubr.bf16.mxu0 %v1435_v12  ;;  %v1438_v21 = vld [vmem:[%s1565_s17 + $0x18] sm:$0xff]   ;;  %v1652_v22 = vld [vmem:[%s238_s13] sm:$0xff] }
  0x13   : > { %1207 = vmatpush3.bf16.msra.mxu0 %v1425_v7  ;;  %1231 = vmatpush3.bf16.msra.mxu1 %v1556_v8 }
  0x14   : > { %1208 = vmatprep.subr.bf16.mxu0 %v1427_v9  ;;  %1232 = vmatprep.subr.bf16.mxu1 %v1471_v1 }
  0x17   : > { %1209 = vmatpush3.bf16.msra.mxu0 %v1427_v9  ;;  %1233 = vmatpush3.bf16.msra.mxu1 %v1570_v10 }
  0x18   : > { %1210 = vmatprep.subr.bf16.mxu0 %v1429_v11  ;;  %1234 = vmatprep.subr.bf16.mxu1 %v1471_v1 }
  0x1b   : > { %1211 = vmatpush3.bf16.msra.mxu0 %v1429_v11  ;;  %1235 = vmatpush3.bf16.msra.mxu1 %v1581_v13 }
  0x1c   : > { %1212 = vmatprep.subr.bf16.mxu0 %v1431_v14  ;;  %1236 = vmatprep.subr.bf16.mxu1 %v1471_v1 }
  0x1f   : > { %1213 = vmatpush3.bf16.msra.mxu0 %v1431_v14  ;;  %1237 = vmatpush3.bf16.msra.mxu1 %v1591_v15 }
  0x20   : > { %1214 = vmatprep.subr.bf16.mxu0 %v1433_v16  ;;  %1238 = vmatprep.subr.bf16.mxu1 %v1471_v1 }
  0x23   : > { %1215 = vmatpush3.bf16.msra.mxu0 %v1433_v16  ;;  %1239 = vmatpush3.bf16.msra.mxu1 %v1602_v17 }
  0x24   : > { %1244 = vmatprep.subr.bf16.mxu0 %v1471_v1  ;;  %1264 = vmatprep.subr.bf16.mxu1 %v1471_v1 }
  0x26   : > { %1217 = vmatmul.mubr.bf16.vlgmr.msra.gmra.mrb[0].mxu0 %v1436_v18  ;;  %1241 = vmatmul.mubr.bf16.vlgmr.msra.gmra.mrb[0].mxu1 %v1473_v19  ;;  %v1441_v18 = vld [vmem:[%s1820_s4 + $0x10] sm:$0xff]   ;;  %v1442_v19 = vld [vmem:[%s1820_s4 + $0x18] sm:$0xff]  }
  0x27   : > { %1245 = vmatpush3.bf16.msra.mxu0 %v1521_v2  ;;  %1265 = vmatpush3.bf16.msra.mxu1 %v1521_v2 }
  0x28   : > { %1246 = vmatprep.subr.bf16.mxu0 %v1471_v1  ;;  %1266 = vmatprep.subr.bf16.mxu1 %v1471_v1 }
  0x29   : > { %1280 = vmatprep.mubr.msk.bf16.mxu1 %vm1472_vm0, %v1471_v1  ;;  %1220 = vmatprep.mubr.bf16.mxu0 %v1437_v20  ;;  %v1443_v20 = vld [vmem:[%s1820_s4 + $0x20] sm:$0xff]  }
  0x2b   : > { %1247 = vmatpush3.bf16.msra.mxu0 %v1531_v4  ;;  %1267 = vmatpush3.bf16.msra.mxu1 %v1531_v4 }
  0x2c   : > { %1248 = vmatprep.subr.bf16.mxu0 %v1471_v1  ;;  %1268 = vmatprep.subr.bf16.mxu1 %v1471_v1 }
  0x2e   : > { %1221 = vmatmul.mubr.bf16.gmra.mrb[4].mxu0 %v1438_v21  ;;  %v1444_v21 = vld [vmem:[%s1820_s4 + $0x28] sm:$0xff]  }
  0x2f   : > { %1249 = vmatpush3.bf16.msra.mxu0 %v1545_v6  ;;  %1269 = vmatpush3.bf16.msra.mxu1 %v1545_v6 }
  0x30   : > { %1250 = vmatprep.subr.bf16.mxu0 %v1471_v1  ;;  %1270 = vmatprep.subr.bf16.mxu1 %v1471_v1 }
  0x31   : > { %1260 = vmatprep.mubr.msk.bf16.mxu0 %vm1472_vm0, %v1471_v1 }
  0x33   : > { %1251 = vmatpush3.bf16.msra.mxu0 %v1556_v8  ;;  %1271 = vmatpush3.bf16.msra.mxu1 %v1556_v8 }
  0x34   : > { %1252 = vmatprep.subr.bf16.mxu0 %v1471_v1  ;;  %1272 = vmatprep.subr.bf16.mxu1 %v1471_v1 }
  0x37   : > { %1253 = vmatpush3.bf16.msra.mxu0 %v1570_v10  ;;  %1273 = vmatpush3.bf16.msra.mxu1 %v1570_v10 }
  0x38   : > { %1254 = vmatprep.subr.bf16.mxu0 %v1471_v1  ;;  %1274 = vmatprep.subr.bf16.mxu1 %v1471_v1 }
  0x3b   : > { %1255 = vmatpush3.bf16.msra.mxu0 %v1581_v13  ;;  %1275 = vmatpush3.bf16.msra.mxu1 %v1581_v13 }
  0x3c   : > { %1256 = vmatprep.subr.bf16.mxu0 %v1471_v1  ;;  %1276 = vmatprep.subr.bf16.mxu1 %v1471_v1 }
  0x3f   : > { %1257 = vmatpush3.bf16.msra.mxu0 %v1591_v15  ;;  %1277 = vmatpush3.bf16.msra.mxu1 %v1591_v15 }
  0x40   : > { %1258 = vmatprep.subr.bf16.mxu0 %v1471_v1  ;;  %1278 = vmatprep.subr.bf16.mxu1 %v1471_v1 }
  0x43   : > { %1259 = vmatpush3.bf16.msra.mxu0 %v1602_v17  ;;  %1279 = vmatpush3.bf16.msra.mxu1 %v1602_v17 }
  0x44   : > { %1284 = vmatprep.subr.bf16.mxu0 %v1471_v1  ;;  %1304 = vmatprep.subr.bf16.mxu1 %v1471_v1 }
  0xf9   : > { %v1218_v23 = vpop.f32.mrb[0].mxu0  ;;  %v516_v24 = vpop.f32.mrb[0].mxu1 }
  0xfa   : > { %v376_v25 = vpop.f32.mrb[1].mxu0  ;;  %v1242_v26 = vpop.f32.mrb[1].mxu1  ;;  %v572_v47 = vadd.f32 %v1218_v23, %v1652_v22  ;;  %v1445_v23 = vld [vmem:[%s1820_s4 + $0x30] sm:$0xff]  }
  0xfb   : > { %v433_v27 = vadd.f32 %v1652_v22, %v376_v25  ;;  %v1655_v28 = vpop.f32.mrb[2].mxu0  ;;  %v519_v29 = vpop.f32.mrb[2].mxu1 }
  0xfc   : > { %v379_v30 = vpop.f32.mrb[3].mxu0  ;;  %v1243_v31 = vpop.f32.mrb[3].mxu1  ;;  %v618_v55 = vadd.f32 %v1655_v28, %v1652_v22 }
  0xfd   : > { %v522_v32 = vadd.f32 %v516_v24, %v433_v27  ;;  %v526_v39 = vadd.f32 %v1652_v22, %v379_v30  ;;  %v1446_v24 = vld [vmem:[%s1820_s4 + $0x38] sm:$0xff]  }
  0xff   : > { %1447 = vtanh.f32 %v522_v32 }
 0x101   : > { %v1679_v35 = vpop.f32.mrb[4].mxu0 }
 0x102   : > { %v1681_v36 = vpop.f32.mrb[5].mxu0  ;;  %v756_v27 = vadd.f32 %v1679_v35, %v1652_v22 }
 0x103   : > { %v1683_v37 = vpop.f32.mrb[6].mxu0  ;;  %v664_v63 = vadd.f32 %v1652_v22, %v1681_v36 }
 0x104   : > { %v1685_v38 = vpop.f32.mrb[7].mxu0 }
 0x109   : > { %v1657_v33 = vpop.eup %1447 }
 0x10a   : > { %v527_v34 = vpack.c.bf16 %v1657_v33, %v1657_v33 }
 0x10c   : > { %1261 = vmatmul.mubr.bf16.vlgmr.msra.gmra.mrb[8].mxu0 %v527_v34 }
 0x10d   : > { %1285 = vmatpush3.bf16.msra.mxu0 %v1521_v2  ;;  %1300 = vmatprep.mubr.msk.bf16.mxu0 %vm1472_vm0, %v1471_v1 }
 0x10e   : > { %1286 = vmatprep.subr.bf16.mxu0 %v1471_v1 }
 0x111   : > { %1287 = vmatpush3.bf16.msra.mxu0 %v1531_v4 }
 0x112   : > { %1288 = vmatprep.subr.bf16.mxu0 %v1471_v1 }
 0x115   : > { %1289 = vmatpush3.bf16.msra.mxu0 %v1545_v6 }
 0x116   : > { %1290 = vmatprep.subr.bf16.mxu0 %v1471_v1 }
 0x119   : > { %1291 = vmatpush3.bf16.msra.mxu0 %v1556_v8 }
 0x11a   : > { %1292 = vmatprep.subr.bf16.mxu0 %v1471_v1 }
 0x11d   : > { %1293 = vmatpush3.bf16.msra.mxu0 %v1570_v10 }
 0x11e   : > { %1294 = vmatprep.subr.bf16.mxu0 %v1471_v1 }
 0x121   : > { %1295 = vmatpush3.bf16.msra.mxu0 %v1581_v13 }
 0x122   : > { %1296 = vmatprep.subr.bf16.mxu0 %v1471_v1 }
 0x125   : > { %1297 = vmatpush3.bf16.msra.mxu0 %v1591_v15 }
 0x126   : > { %1298 = vmatprep.subr.bf16.mxu0 %v1471_v1 }
 0x129   : > { %1299 = vmatpush3.bf16.msra.mxu0 %v1602_v17 }
 0x12a   : > { %1324 = vmatprep.subr.bf16.mxu0 %v1471_v1 }
 0x1df   : > { %v562_v40 = vpop.f32.mrb[8].mxu0 }
 0x1e0   : > { %v568_v41 = vadd.f32 %v562_v40, %v526_v39  ;;  %v1262_v42 = vpop.f32.mrb[9].mxu0  ;;  %v802_v40 = vadd.f32 %v1683_v37, %v1652_v22 }
 0x1e1   : > { %v565_v43 = vpop.f32.mrb[10].mxu0 }
 0x1e2   : > { %1449 = vtanh.f32 %v568_v41  ;;  %v1263_v44 = vpop.f32.mrb[11].mxu0 }
 0x1ec   : > { %v1688_v45 = vpop.eup %1449 }
 0x1ed   : > { %v573_v46 = vpack.c.bf16 %v1688_v45, %v1688_v45 }
 0x1ef   : > { %1281 = vmatmul.mubr.bf16.vlgmr.msra.gmra.mrb[4].mxu1 %v573_v46 }
 0x1f0   : > { %1305 = vmatpush3.bf16.msra.mxu1 %v1521_v2  ;;  %1320 = vmatprep.mubr.msk.bf16.mxu1 %vm1472_vm0, %v1471_v1 }
 0x1f1   : > { %1306 = vmatprep.subr.bf16.mxu1 %v1471_v1 }
 0x1f4   : > { %1307 = vmatpush3.bf16.msra.mxu1 %v1531_v4 }
 0x1f5   : > { %1308 = vmatprep.subr.bf16.mxu1 %v1471_v1 }
 0x1f8   : > { %1309 = vmatpush3.bf16.msra.mxu1 %v1545_v6 }
 0x1f9   : > { %1310 = vmatprep.subr.bf16.mxu1 %v1471_v1 }
 0x1fc   : > { %1311 = vmatpush3.bf16.msra.mxu1 %v1556_v8 }
 0x1fd   : > { %1312 = vmatprep.subr.bf16.mxu1 %v1471_v1 }
 0x200   : > { %1313 = vmatpush3.bf16.msra.mxu1 %v1570_v10 }
 0x201   : > { %1314 = vmatprep.subr.bf16.mxu1 %v1471_v1 }
 0x204   : > { %1315 = vmatpush3.bf16.msra.mxu1 %v1581_v13 }
 0x205   : > { %1316 = vmatprep.subr.bf16.mxu1 %v1471_v1 }
 0x208   : > { %1317 = vmatpush3.bf16.msra.mxu1 %v1591_v15 }
 0x209   : > { %1318 = vmatprep.subr.bf16.mxu1 %v1471_v1 }
 0x20c   : > { %1319 = vmatpush3.bf16.msra.mxu1 %v1602_v17 }
 0x20d   : > { %1344 = vmatprep.subr.bf16.mxu1 %v1471_v1 }
 0x2c2   : > { %v608_v48 = vpop.f32.mrb[4].mxu1 }
 0x2c3   : > { %v614_v49 = vadd.f32 %v608_v48, %v572_v47  ;;  %v1282_v50 = vpop.f32.mrb[5].mxu1 }
 0x2c4   : > { %v611_v51 = vpop.f32.mrb[6].mxu1 }
 0x2c5   : > { %1451 = vtanh.f32 %v614_v49  ;;  %v1283_v52 = vpop.f32.mrb[7].mxu1 }
 0x2cf   : > { %v1711_v53 = vpop.eup %1451 }
 0x2d0   : > { %v619_v54 = vpack.c.bf16 %v1711_v53, %v1711_v53 }
 0x2d2   : > { %1301 = vmatmul.mubr.bf16.vlgmr.msra.gmra.mrb[12].mxu0 %v619_v54 }
 0x2d3   : > { %1325 = vmatpush3.bf16.msra.mxu0 %v1521_v2  ;;  %1340 = vmatprep.mubr.msk.bf16.mxu0 %vm1472_vm0, %v1471_v1 }
 0x2d4   : > { %1326 = vmatprep.subr.bf16.mxu0 %v1471_v1 }
 0x2d7   : > { %1327 = vmatpush3.bf16.msra.mxu0 %v1531_v4 }
 0x2d8   : > { %1328 = vmatprep.subr.bf16.mxu0 %v1471_v1 }
 0x2db   : > { %1329 = vmatpush3.bf16.msra.mxu0 %v1545_v6 }
 0x2dc   : > { %1330 = vmatprep.subr.bf16.mxu0 %v1471_v1 }
 0x2df   : > { %1331 = vmatpush3.bf16.msra.mxu0 %v1556_v8 }
 0x2e0   : > { %1332 = vmatprep.subr.bf16.mxu0 %v1471_v1 }
 0x2e3   : > { %1333 = vmatpush3.bf16.msra.mxu0 %v1570_v10 }
 0x2e4   : > { %1334 = vmatprep.subr.bf16.mxu0 %v1471_v1 }
 0x2e7   : > { %1335 = vmatpush3.bf16.msra.mxu0 %v1581_v13 }
 0x2e8   : > { %1336 = vmatprep.subr.bf16.mxu0 %v1471_v1 }
 0x2eb   : > { %1337 = vmatpush3.bf16.msra.mxu0 %v1591_v15 }
 0x2ec   : > { %1338 = vmatprep.subr.bf16.mxu0 %v1471_v1 }
 0x2ef   : > { %1339 = vmatpush3.bf16.msra.mxu0 %v1602_v17 }
 0x2f0   : > { %1364 = vmatprep.subr.bf16.mxu0 %v1471_v1 }
 0x3a5   : > { %v654_v56 = vpop.f32.mrb[12].mxu0 }
 0x3a6   : > { %v660_v57 = vadd.f32 %v654_v56, %v618_v55  ;;  %v1302_v58 = vpop.f32.mrb[13].mxu0 }
 0x3a7   : > { %v657_v59 = vpop.f32.mrb[14].mxu0 }
 0x3a8   : > { %1453 = vtanh.f32 %v660_v57  ;;  %v1303_v60 = vpop.f32.mrb[15].mxu0 }
 0x3b2   : > { %v1735_v61 = vpop.eup %1453 }
 0x3b3   : > { %v665_v62 = vpack.c.bf16 %v1735_v61, %v1735_v61  ;;  %v856_v25 = vpack.c.bf16 %v1735_v61, %v1711_v53 }
 0x3b5   : > { %1321 = vmatmul.mubr.bf16.vlgmr.msra.gmra.mrb[8].mxu1 %v665_v62 }
 0x3b6   : > { %1345 = vmatpush3.bf16.msra.mxu1 %v1521_v2  ;;  %1360 = vmatprep.mubr.msk.bf16.mxu1 %vm1472_vm0, %v1471_v1 }
 0x3b7   : > { %1346 = vmatprep.subr.bf16.mxu1 %v1471_v1 }
 0x3ba   : > { %1347 = vmatpush3.bf16.msra.mxu1 %v1531_v4 }
 0x3bb   : > { %1348 = vmatprep.subr.bf16.mxu1 %v1471_v1 }
 0x3be   : > { %1349 = vmatpush3.bf16.msra.mxu1 %v1545_v6 }
 0x3bf   : > { %1350 = vmatprep.subr.bf16.mxu1 %v1471_v1 }
 0x3c2   : > { %1351 = vmatpush3.bf16.msra.mxu1 %v1556_v8 }
 0x3c3   : > { %1352 = vmatprep.subr.bf16.mxu1 %v1471_v1 }
 0x3c6   : > { %1353 = vmatpush3.bf16.msra.mxu1 %v1570_v10 }
 0x3c7   : > { %1354 = vmatprep.subr.bf16.mxu1 %v1471_v1 }
 0x3ca   : > { %1355 = vmatpush3.bf16.msra.mxu1 %v1581_v13 }
 0x3cb   : > { %1356 = vmatprep.subr.bf16.mxu1 %v1471_v1 }
 0x3ce   : > { %1357 = vmatpush3.bf16.msra.mxu1 %v1591_v15 }
 0x3cf   : > { %1358 = vmatprep.subr.bf16.mxu1 %v1471_v1 }
 0x3d2   : > { %1359 = vmatpush3.bf16.msra.mxu1 %v1602_v17 }
 0x488   : > { %v700_v0 = vpop.f32.mrb[8].mxu1 }
 0x489   : > { %v706_v3 = vadd.f32 %v700_v0, %v664_v63  ;;  %v1322_v5 = vpop.f32.mrb[9].mxu1 }
 0x48a   : > { %v703_v7 = vpop.f32.mrb[10].mxu1 }
 0x48b   : > { %1455 = vtanh.f32 %v706_v3  ;;  %v1323_v9 = vpop.f32.mrb[11].mxu1 }
 0x495   : > { %v1456_v11 = vpop.eup %1455 }
 0x496   : > { %v711_v12 = vpack.c.bf16 %v1456_v11, %v1456_v11 }
 0x498   : > { %1341 = vmatmul.mubr.bf16.vlgmr.msra.gmra.mrb[16].mxu0 %v711_v12 }
 0x499   : > { %1365 = vmatpush3.bf16.msra.mxu0 %v1521_v2  ;;  %1380 = vmatprep.mubr.msk.bf16.mxu0 %vm1472_vm0, %v1471_v1  ;;  %v1439_v2 = vld [vmem:[%s1820_s4] sm:$0xff]  }
 0x49a   : > { %1366 = vmatprep.subr.bf16.mxu0 %v1471_v1  ;;  %1384 = vmatprep.subr.bf16.mxu1 %v1439_v2 }
 0x49d   : > { %1367 = vmatpush3.bf16.msra.mxu0 %v1531_v4  ;;  %v710_v4 = vadd.f32 %v1652_v22, %v1685_v38 }
 0x49e   : > { %1368 = vmatprep.subr.bf16.mxu0 %v1471_v1 }
 0x4a1   : > { %1369 = vmatpush3.bf16.msra.mxu0 %v1545_v6 }
 0x4a2   : > { %1370 = vmatprep.subr.bf16.mxu0 %v1471_v1 }
 0x4a5   : > { %1371 = vmatpush3.bf16.msra.mxu0 %v1556_v8 }
 0x4a6   : > { %1372 = vmatprep.subr.bf16.mxu0 %v1471_v1 }
 0x4a9   : > { %1373 = vmatpush3.bf16.msra.mxu0 %v1570_v10 }
 0x4aa   : > { %1374 = vmatprep.subr.bf16.mxu0 %v1471_v1 }
 0x4ad   : > { %1375 = vmatpush3.bf16.msra.mxu0 %v1581_v13 }
 0x4ae   : > { %1376 = vmatprep.subr.bf16.mxu0 %v1471_v1 }
 0x4b1   : > { %1377 = vmatpush3.bf16.msra.mxu0 %v1591_v15 }
 0x4b2   : > { %1378 = vmatprep.subr.bf16.mxu0 %v1471_v1  ;;  %v1440_v1 = vld [vmem:[%s1820_s4 + $0x8] sm:$0xff]  }
 0x4b5   : > { %1379 = vmatpush3.bf16.msra.mxu0 %v1602_v17  ;;  %v855_v17 = vpack.c.bf16 %v1688_v45, %v1657_v33 }
 0x56b   : > { %v746_v6 = vpop.f32.mrb[16].mxu0 }
 0x56c   : > { %v752_v8 = vadd.f32 %v746_v6, %v710_v4  ;;  %v1342_v10 = vpop.f32.mrb[17].mxu0 }
 0x56d   : > { %v749_v13 = vpop.f32.mrb[18].mxu0 }
 0x56e   : > { %1457 = vtanh.f32 %v752_v8  ;;  %v1343_v14 = vpop.f32.mrb[19].mxu0 }
 0x578   : > { %v1458_v16 = vpop.eup %1457 }
 0x579   : > { %v757_v15 = vpack.c.bf16 %v1458_v16, %v1458_v16  ;;  %v857_v26 = vpack.c.bf16 %v1458_v16, %v1456_v11 }
 0x57b   : > { %1361 = vmatmul.mubr.bf16.vlgmr.msra.gmra.mrb[12].mxu1 %v757_v15 }
 0x57c   : > { %1385 = vmatpush3.bf16.msra.mxu1 %v1439_v2  ;;  %1400 = vmatprep.mubr.bf16.mxu1 %v855_v17 }
 0x57d   : > { %1386 = vmatprep.subr.bf16.mxu1 %v1440_v1 }
 0x580   : > { %1387 = vmatpush3.bf16.msra.mxu1 %v1440_v1 }
 0x581   : > { %1388 = vmatprep.subr.bf16.mxu1 %v1441_v18 }
 0x584   : > { %1389 = vmatpush3.bf16.msra.mxu1 %v1441_v18 }
 0x585   : > { %1390 = vmatprep.subr.bf16.mxu1 %v1442_v19 }
 0x588   : > { %1391 = vmatpush3.bf16.msra.mxu1 %v1442_v19 }
 0x589   : > { %1392 = vmatprep.subr.bf16.mxu1 %v1443_v20 }
 0x58c   : > { %1393 = vmatpush3.bf16.msra.mxu1 %v1443_v20 }
 0x58d   : > { %1394 = vmatprep.subr.bf16.mxu1 %v1444_v21 }
 0x590   : > { %1395 = vmatpush3.bf16.msra.mxu1 %v1444_v21 }
 0x591   : > { %1396 = vmatprep.subr.bf16.mxu1 %v1445_v23 }
 0x594   : > { %1397 = vmatpush3.bf16.msra.mxu1 %v1445_v23 }
 0x595   : > { %1398 = vmatprep.subr.bf16.mxu1 %v1446_v24 }
 0x598   : > { %1399 = vmatpush3.bf16.msra.mxu1 %v1446_v24 }
 0x59b   : > { %1401 = vmatmul.mubr.bf16.vlgmr.msra.gmra.mrb[16].mxu1 %v856_v25 }
 0x59c   : > { %1404 = vmatprep.mubr.bf16.mxu1 %v857_v26 }
 0x64e   : > { %v792_v28 = vpop.f32.mrb[12].mxu1 }
 0x64f   : > { %v798_v29 = vadd.f32 %v792_v28, %v756_v27  ;;  %v1362_v30 = vpop.f32.mrb[13].mxu1 }
 0x650   : > { %v795_v31 = vpop.f32.mrb[14].mxu1 }
 0x651   : > { %1459 = vtanh.f32 %v798_v29  ;;  %v1363_v32 = vpop.f32.mrb[15].mxu1 }
 0x65b   : > { %v1460_v33 = vpop.eup %1459 }
 0x65c   : > { %v803_v34 = vpack.c.bf16 %v1460_v33, %v1460_v33 }
 0x65e   : > { %1381 = vmatmul.mubr.bf16.vlgmr.msra.gmra.mrb[20].mxu0 %v803_v34 }
 0x66e   : > { %v1402_v36 = vpop.f32.mrb[16].mxu1 }
 0x66f   : > { %990 = vst [vmem:[%s243_s10 + $0x10] sm:$0xff] %v1402_v36  ;;  %v957_v38 = vpop.f32.mrb[17].mxu1 }
 0x670   : > { %988 = vst [vmem:[%s243_s10] sm:$0xff] %v957_v38  ;;  %v1403_v39 = vpop.f32.mrb[18].mxu1 }
 0x671   : > { %991 = vst [vmem:[%s243_s10 + $0x18] sm:$0xff] %v1403_v39  ;;  %v960_v35 = vpop.f32.mrb[19].mxu1 }
 0x672   : > { %989 = vst [vmem:[%s243_s10 + $0x8] sm:$0xff] %v960_v35 }
 0x731   : > { %v838_v41 = vpop.f32.mrb[20].mxu0 }
 0x732   : > { %v844_v42 = vadd.f32 %v838_v41, %v802_v40  ;;  %v1382_v43 = vpop.f32.mrb[21].mxu0 }
 0x733   : > { %v841_v44 = vpop.f32.mrb[22].mxu0 }
 0x734   : > { %1461 = vtanh.f32 %v844_v42  ;;  %v1383_v45 = vpop.f32.mrb[23].mxu0 }
 0x73e   : > { %v1462_v46 = vpop.eup %1461 }
 0x73f   : > { %v858_v47 = vpack.c.bf16 %v1462_v46, %v1460_v33 }
 0x741   : > { %1405 = vmatmul.mubr.bf16.gmra.mrb[20].mxu1 %v858_v47 }
 0x814   : > { %v1406_v48 = vpop.f32.mrb[20].mxu1 }
 0x815   : > { %994 = vst [vmem:[%s243_s10 + $0x30] sm:$0xff] %v1406_v48  ;;  %v973_v49 = vpop.f32.mrb[21].mxu1 }
 0x816   : > { %992 = vst [vmem:[%s243_s10 + $0x20] sm:$0xff] %v973_v49  ;;  %v1407_v50 = vpop.f32.mrb[22].mxu1 }
 0x817   : > { %995 = vst [vmem:[%s243_s10 + $0x38] sm:$0xff] %v1407_v50  ;;  %v976_v51 = vpop.f32.mrb[23].mxu1 }
 0x818   : > { %993 = vst [vmem:[%s243_s10 + $0x28] sm:$0xff] %v976_v51 }
 0x819 PF: > { %s15_s18 = sadd.s32 1, %s1469_s18  }
 0x81a   : > { %p12_p5 = scmp.ge.s32.totalorder %s15_s18, 4  }
 0x81c   :  { %14 = sbr.rel (!%p12_p5) target bundleno = 1 (0x1), region = 73 }

</bundles_post_ra>
